<compile_context>
chip_gen: v7x
topology: tpu7x:2x2x1
jax: 0.10.0
libtpu: 0.0.40
codegen_flags: <defaults>
</compile_context>

<pallas_src>
import numpy as np
import jax
import jax.numpy as jnp
from jax.experimental import pallas as pl
from jax.experimental.pallas import tpu as pltpu


def _round_up(x: int, m: int) -> int:
    return (x + m - 1) // m * m


def _phase_shifter_kernel(x_ref, w_ref, o_ref):
    # x_ref : (tm, in_features)      native dtype (cast to bf16 on the VPU here)
    # w_ref : (in_features, 2*n_pad) bf16  ([R | -I ; I | R], lane-padded, resident)
    # o_ref : (tm, 2*n_pad)          out dtype ([real | imag] halves, lane aligned)
    x = x_ref[...].astype(jnp.bfloat16)
    y = jnp.dot(x, w_ref[...], preferred_element_type=jnp.float32)
    o_ref[...] = y.astype(o_ref.dtype)


def phase_shifter_forward(x, theta, scale=1.0, *, out_dtype=None,
                          max_rows_per_tile=512):
    """y = x @ [[cos, -sin], [sin, cos]](theta) / scale   (Pallas TPU kernel)."""
    in_dim, out_features = theta.shape
    in_features = 2 * in_dim
    assert x.shape[-1] == in_features, (x.shape, in_features)
    if out_dtype is None:
        out_dtype = x.dtype

    # --- tiny parameter glue in plain JAX: assemble W = [[R,-I],[I,R]] ---
    inv_scale = jnp.float32(1.0 / scale)
    real_k = inv_scale * jnp.cos(theta.astype(jnp.float32))
    imag_k = inv_scale * jnp.sin(theta.astype(jnp.float32))
    # Lane-dense halves: pad each half's columns to a multiple of 128 with
    # zeros (zero columns contribute nothing and are stripped below).
    n_pad = _round_up(out_features, 128)
    if n_pad != out_features:
        pad_cols = ((0, 0), (0, n_pad - out_features))
        real_k = jnp.pad(real_k, pad_cols)
        imag_k = jnp.pad(imag_k, pad_cols)
    w = jnp.concatenate(
        [jnp.concatenate([real_k, -imag_k], axis=-1),
         jnp.concatenate([imag_k, real_k], axis=-1)],
        axis=0).astype(jnp.bfloat16)                      # (in_features, 2*n_pad)

    # --- flatten leading dims, pick the row tile ---
    lead_shape = x.shape[:-1]
    m = int(np.prod(lead_shape)) if lead_shape else 1
    x_bytes = jnp.dtype(x.dtype).itemsize
    o_bytes = jnp.dtype(out_dtype).itemsize
    # VMEM: double-buffered x + out tiles, single-buffered resident W.
    w_vmem = in_features * 2 * n_pad * 2
    per_row_vmem = 2 * in_features * x_bytes + 2 * (2 * n_pad) * o_bytes
    vmem_budget = 12 * 1024 * 1024   # conservative vs v5e's 16 MiB scoped default
    tm_vmem_cap = max(8, ((vmem_budget - w_vmem) // per_row_vmem) // 8 * 8)
    # >=2 grid steps whenever m > 8 so "parallel" can use both v7x TensorCores.
    tm = min(max_rows_per_tile, tm_vmem_cap, _round_up(max((m + 1) // 2, 8), 8))
    m_pad = _round_up(m, tm)

    x2d = x.reshape(m, in_features)
    if m_pad != m:
        x2d = jnp.pad(x2d, ((0, m_pad - m), (0, 0)))

    flops = 2 * m_pad * in_features * (2 * n_pad)
    bytes_accessed = (m_pad * in_features * x_bytes       # x (native dtype)
                      + in_features * 2 * n_pad * 2       # W (bf16, read once)
                      + m_pad * 2 * n_pad * o_bytes)      # out

    out2d = pl.pallas_call(
        _phase_shifter_kernel,
        out_shape=jax.ShapeDtypeStruct((m_pad, 2 * n_pad), out_dtype),
        grid_spec=pl.GridSpec(
            grid=(m_pad // tm,),
            in_specs=[
                pl.BlockSpec((tm, in_features), lambda i: (i, 0)),        # x row tile
                pl.BlockSpec((in_features, 2 * n_pad), lambda i: (0, 0),
                             pipeline_mode=pl.Buffered(buffer_count=1)),  # W resident
            ],
            out_specs=pl.BlockSpec((tm, 2 * n_pad), lambda i: (i, 0)),
        ),
        compiler_params=pltpu.CompilerParams(
            dimension_semantics=("parallel",),
        ),
        cost_estimate=pl.CostEstimate(
            flops=flops, transcendentals=0, bytes_accessed=bytes_accessed),
    )(x2d, w)

    # Strip padding: rows beyond m and per-half lane padding (single fused
    # slice + copy; no concatenate).
    if n_pad == out_features:
        y2d = out2d[:m]
    else:
        y2d = (out2d[:m]
               .reshape(m, 2, n_pad)[:, :, :out_features]
               .reshape(m, 2 * out_features))
    return y2d.reshape(*lead_shape, 2 * out_features)


if __name__ == "__main__":
    # Small shapes consistent with the module: in_features=32 -> in_dim=16,
    # out_features=16, scale=1.  Input: (batch=2, seq=8, in_features=32).
    in_features = 32
    out_features = 16
    scale = 1.0
    in_dim = in_features // 2

    key = jax.random.PRNGKey(0)
    k_theta, k_x = jax.random.split(key)
    theta = jax.random.uniform(
        k_theta, (in_dim, out_features), dtype=jnp.float32,
        minval=0.0, maxval=2.0 * np.pi,
    )
    x = jax.random.normal(k_x, (2, 8, in_features), dtype=jnp.float32)

    y = jax.block_until_ready(phase_shifter_forward(x, theta, scale))

    # Pure-JAX f32 reference (same math as the PyTorch forward).
    real_k = (1.0 / scale) * jnp.cos(theta)
    imag_k = (1.0 / scale) * jnp.sin(theta)
    w_ref = jnp.concatenate(
        [jnp.concatenate([real_k, -imag_k], axis=-1),
         jnp.concatenate([imag_k, real_k], axis=-1)], axis=0)
    y_ref = x @ w_ref

    assert y.shape == (2, 8, 2 * out_features), y.shape
    # bf16 MXU inputs with f32 accumulation -> looser tolerance vs f32 reference.
    np.testing.assert_allclose(np.asarray(y), np.asarray(y_ref),
                               rtol=5e-2, atol=5e-2)
    print("KERNEL_OK")
</pallas_src>

<mosaic_0001>
module attributes {stable_mosaic.version = 11 : i64} {
  func.func @_phase_shifter_kernel(%arg0: i32, %arg1: memref<8x32xf32, #tpu.memory_space<vmem>>, %arg2: memref<32x256xbf16, #tpu.memory_space<vmem>>, %arg3: memref<8x256xf32, #tpu.memory_space<vmem>>) attributes {dimension_semantics = [#tpu.dimension_semantics<parallel>], iteration_bounds = array<i64: 2>, scalar_prefetch = 0 : i64, scratch_operands = 0 : i64, tpu.core_type = #tpu.core_type<tc>, window_params = [{transform_indices = @transform_0, window_bounds = array<i64: 8, 32>}, {pipeline_mode = #tpu.pipeline_mode<synchronous>, transform_indices = @transform_1, window_bounds = array<i64: 32, 256>}, {transform_indices = @transform_2, window_bounds = array<i64: 8, 256>}]} {
    %c0 = arith.constant 0 : index
    %c0_0 = arith.constant 0 : index
    %0 = vector.load %arg1[%c0, %c0_0] : memref<8x32xf32, #tpu.memory_space<vmem>>, vector<8x32xf32>
    %1 = arith.truncf %0 : vector<8x32xf32> to vector<8x32xbf16>
    %c0_1 = arith.constant 0 : index
    %c0_2 = arith.constant 0 : index
    %2 = vector.load %arg2[%c0_1, %c0_2] : memref<32x256xbf16, #tpu.memory_space<vmem>>, vector<32x256xbf16>
    %cst = arith.constant dense<0.000000e+00> : vector<8x256xf32>
    %3 = tpu.matmul %1, %2, %cst {dimension_numbers = #tpu.dot_dimension_numbers<[1], [0], [0], [1], [0, 0, 1, 1], [], []>} : vector<8x32xbf16>, vector<32x256xbf16>, vector<8x256xf32> -> vector<8x256xf32>
    %c0_3 = arith.constant 0 : index
    %c0_4 = arith.constant 0 : index
    %4 = vector.load %arg3[%c0_3, %c0_4] : memref<8x256xf32, #tpu.memory_space<vmem>>, vector<8x256xf32>
    tpu.vector_store %arg3[%c0_3, %c0_4], %3 {strides = array<i32>} : memref<8x256xf32, #tpu.memory_space<vmem>>, vector<8x256xf32>,
    return
  }
  func.func @transform_0(%arg0: i32) -> (i32, i32) {
    %c0_i32 = arith.constant 0 : i32
    %c0_i32_0 = arith.constant 0 : i32
    return %arg0, %c0_i32 : i32, i32
  }
  func.func @transform_1(%arg0: i32) -> (i32, i32) {
    %c0_i32 = arith.constant 0 : i32
    %c0_i32_0 = arith.constant 0 : i32
    %c0_i32_1 = arith.constant 0 : i32
    return %c0_i32, %c0_i32_0 : i32, i32
  }
  func.func @transform_2(%arg0: i32) -> (i32, i32) {
    %c0_i32 = arith.constant 0 : i32
    %c0_i32_0 = arith.constant 0 : i32
    return %arg0, %c0_i32 : i32, i32
  }
}

</mosaic_0001>

<bundles_post_ra>
// kernel: tpu_custom_call.1
= control target key start
LH: loop header
LB: loop body
LE: loop exit
PB: predicated region body
PF: predicated region fallthrough
CT: control target
= control target key end

     0   :  { %7 = vsyncpa [#allocation3], 0  ;;  %s778_s0 = inlined_call_operand.hbm [shape: f32[16,32], index: 0, kind: input, shape index: {}]   ;;  %s779_s1 = inlined_call_operand.hbm [shape: bf16[32,256], index: 1, kind: input, shape index: {}]   ;;  %s780_s2 = inlined_call_operand.hbm [shape: f32[16,256], index: 2, kind: output, shape index: {}]  }
   0x1   :  { %9 = vsyncpa [#allocation3 + $0x1], 0 }
   0x2   :  { %10 = vsyncpa [#allocation6], 0 }
   0x3   :  { %11 = vsyncpa [#allocation4], 0 }
   0x4   :  { %13 = vsyncpa [#allocation4 + $0x1], 0  ;;  %s581_s9 = smov 0   ;;  %s583_s10 = smov 0  }
   0x5   :  { %s585_s11 = smov 0   ;;  %s587_s12 = smov 0  }
   0x6 LB: > { %s602_s13 = sadd.s32 4294967295, %s558_s12   ;;  %s343_s14 = sadd.s32 4294967294, %s558_s12   ;;  %s558_s12 = sphi %s587_s12, %s800_s12   ;;  %s554_s11 = sphi %s585_s11, %s799_s11   ;;  %s550_s10 = sphi %s583_s10, %s798_s10   ;;  %s546_s9 = sphi %s581_s9, %s797_s9  }
   0x7   : > { %p39_p0 = scmp.ne.s32.totalorder %s550_s10, %s546_s9  ;;  %p781_p1 = scmp.eq.s32.totalorder %s602_s13, 0 }
   0x8   : > { %p90_p3 = scmp.eq.s32.totalorder %s343_s14, 1  ;;  %p344_p5 = scmp.ge.s32.totalorder %s558_s12, 1 }
   0x9   : > { %p611_p4 = por %p781_p1, %p39_p0  ;;  %p97_p7 = scmp.lt.s32.totalorder %s558_s12, 3 }
   0xa   : > { %p616_p6 = por %p90_p3, %p39_p0  ;;  %s560_s18 = smov [#allocation5]  }
   0xb   : > { %s784_s15 = scalar_select %p611_p4, 1, 0 }
   0xc   : > { %s785_s16 = scalar_select %p616_p6, 1, 0 }
   0xd   : > { %p621_p8 = pnand %p344_p5, %p97_p7  ;;  %s109_s19 = sshll.u32 %s560_s18, 4  ;;  %s625_s19 = int_to_ptr.vmem [resolvable:$true] %s109_s19 }
   0xe   : > { %s637_s21 = sadd.s32 1, %s558_s12   ;;  %s26_s22 = sadd.s32 1, %s554_s11 }
   0xf   : > { %s786_s17 = scalar_select %p621_p8, 1, 0 }
  0x10   : > { %p372_p9 = pneg %p621_p8  ;;  %s23_s23 = ssub.s32 %s558_s12, %s637_s21 }
  0x11   : > { %s430_s26 = scalar_lea.hbm %s779_s1, 512 }
  0x12   : > { %p632_p11 = pnand %p372_p9, %p781_p1  ;;  %p431_p12 = scmp.ne.s32.totalorder %s779_s1, %s430_s26 }
  0x13   : > { %p437_p5 = scmp.lt.u32.totalorder %s430_s26, %s779_s1 }
  0x14   : > { %p432_p13 = pneg %p632_p11 }
  0x16   : > { %p433_p0 = pnand %p432_p13, %p431_p12 }
  0x18   : > { %p434_p3 = pneg %p433_p0 }
  0x1a   : > { %p439_p7 = pnand %p437_p5, %p434_p3 }
  0x1c   : > { %442 = shalt.err (!%p439_p7)
}
  0x1d   : > { %s443_s3 = scalar_lea.vmem %s625_s19, 512  ;;  %p451_p2 = scmp.lt.s32.totalorder %s625_s19, %s625_s19 }
  0x1e   : > { %p444_p9 = scmp.ne.s32.totalorder %s625_s19, %s443_s3  ;;  %p452_p6 = scmp.lt.s32.totalorder %s443_s3, %s443_s3 }
  0x20   : > { %p446_p10 = pnand %p444_p9, %p432_p13  ;;  %p453_p4 = por %p452_p6, %p451_p2 }
  0x22   : > { %p447_p1 = pneg %p446_p10 }
  0x24   : > { %p454_p8 = pnand %p453_p4, %p447_p1 }
  0x26   : > { %457 = shalt.err (!%p454_p8)
}
  0x27   : > { %s561_s4 = smov 128   ;;  %s562_s5 = smov 8  }
  0x28   : > { %375 = dma.hbm_to_vmem [thread:$0]  (!%p632_p11), %s779_s1, 512, %s625_s19, [#allocation6], %s561_s4, %s561_s4, %s562_s5  }
  0x29   : > { %p24_p2 = scmp.eq.s32.totalorder %s23_s23, 0  ;;  %p33_p1 = scmp.ne.s32.totalorder %s554_s11, %s550_s10 }
  0x2a   : > { %p34_p4 = scmp.eq.s32.totalorder %s558_s12, 0  ;;  %p385_p6 = scmp.lt.s32.totalorder %s558_s12, 2 }
  0x2b   : > { %s668_s8 = scalar_select %p24_p2, %s554_s11, %s26_s22  }
  0x2c   : > { %p35_p8 = por %p34_p4, %p33_p1  ;;  %p788_p10 = scmp.eq.s32.totalorder %s602_s13, 1 }
  0x2d   : > { %s123_s18 = sand.u32 1, %s554_s11   ;;  %s348_s24 = sshll.u32 %s558_s12, 7 }
  0x2e   : > { %p672_p12 = por %p788_p10, %p33_p1  ;;  %s347_s25 = sshll.u32 %s123_s18, 3 }
  0x2f   : > { %s681_s27 = scalar_lea.hbm %s778_s0, %s348_s24  ;;  %s127_s19 = scalar_lea.vmem [#allocation2], %s347_s25 }
  0x30   : > { %s134_s22 = sshll.u32 %s127_s19, 4  ;;  %p683_p11 = pnand %p385_p6, %p35_p8  ;;  %s687_s22 = int_to_ptr.vmem [resolvable:$true] %s134_s22 }
  0x31   : > { %s124_s28 = scalar_lea.sflag [#allocation3], %s123_s18  ;;  %s458_s29 = scalar_lea.hbm %s681_s27, 128 }
  0x32   : > { %p459_p13 = scmp.ne.s32.totalorder %s681_s27, %s458_s29  ;;  %p460_p0 = pneg %p683_p11 }
  0x33   : > { %s463_s4 = scalar_lea.hbm %s778_s0, 256  ;;  %p464_p7 = scmp.lt.u32.totalorder %s681_s27, %s778_s0 }
  0x34   : > { %p461_p3 = pnand %p460_p0, %p459_p13  ;;  %p465_p9 = scmp.lt.u32.totalorder %s463_s4, %s458_s29 }
  0x35   : > { %p467_p1 = scmp.lt.u32.totalorder %s458_s29, %s681_s27 }
  0x36   : > { %p462_p5 = pneg %p461_p3  ;;  %p466_p2 = por %p465_p9, %p464_p7 }
  0x38   : > { %p468_p4 = por %p467_p1, %p466_p2 }
  0x3a   : > { %p469_p6 = pnand %p468_p4, %p462_p5 }
  0x3c   : > { %472 = shalt.err (!%p469_p6)
}
  0x3d   : > { %s473_s7 = scalar_lea.vmem %s687_s22, 128  ;;  %s563_s18 = smov [#allocation2]  }
  0x3e   : > { %p474_p8 = scmp.ne.s32.totalorder %s687_s22, %s473_s7  ;;  %s478_s24 = sshll.u32 %s563_s18, 4  ;;  %s479_s24 = int_to_ptr.vmem [resolvable:$false] %s478_s24 }
  0x3f   : > { %s480_s25 = scalar_lea.vmem %s479_s24, 256  ;;  %p481_p3 = scmp.lt.s32.totalorder %s687_s22, %s479_s24 }
  0x40   : > { %p476_p10 = pnand %p474_p8, %p460_p0  ;;  %p482_p7 = scmp.lt.s32.totalorder %s480_s25, %s473_s7 }
  0x42   : > { %p477_p13 = pneg %p476_p10  ;;  %p483_p9 = por %p482_p7, %p481_p3 }
  0x44   : > { %p484_p2 = pnand %p483_p9, %p477_p13 }
  0x46   : > { %487 = shalt.err (!%p484_p2)
}
  0x47   : > { %379 = dma.hbm_to_vmem [thread:$0]  (!%p683_p11), %s681_s27, 128, %s687_s22, %s124_s28  }
  0x48   : > { %p791_p5 = scmp.ne.s32.totalorder %s786_s17, 0 }
  0x49   : > { %s717_s20 = sand.u32 (!%p791_p5), 1, %s550_s10   ;;  %p792_p0 = scmp.ne.s32.totalorder (!%p791_p5), %s784_s15, 0 }
  0x4a   : > { %143 = sbr.rel (%p791_p5) target bundleno = 322 (0x142), region = 28  ;;  %s350_s26 = sshll.u32 (!%p791_p5), %s717_s20, 3 }
  0x4b   : > { %s146_s19 = scalar_lea.sflag (!%p791_p5), [#allocation3], %s717_s20  ;;  %s149_s29 = scalar_lea.vmem (!%p791_p5), [#allocation2], %s350_s26 }
  0x51   : > { %533 = dma.done.wait (%p792_p0), %s146_s19, 128  }
  0x52   : > { %535 = vsyncadd (%p792_p0), %s146_s19, 4294967168  ;;  %p793_p1 = scmp.eq.s32.totalorder %s602_s13, 0 }
  0x54   : > { %537 = dma.done.wait (%p793_p1), [#allocation6], 512   ;;  %p794_p11 = pmov %p793_p1 }
  0x55   : > { %v564_v0 = vmov 0   ;;  %v424_v1 = vld [vmem:[#allocation5 + $0x4] ss:$8 sps:$4 sm:$0xff]   ;;  %v426_v2 = vld [vmem:[#allocation5] ss:$8 sps:$4 sm:$0xff]   ;;  %v175_v5 = vld [vmem:[%s149_s29] sm:$0xff] }
  0x56   : > { %539 = vsyncadd (%p794_p11), [#allocation6], 4294966784  ;;  %237 = vmatprep.mubr.bf16.mxu0 %v564_v0  ;;  %205 = vmatprep.subr.bf16.mxu0 %v424_v1  ;;  %v427_v3 = vld [vmem:[#allocation5 + $0x14] ss:$8 sps:$4 sm:$0xff]   ;;  %v429_v4 = vld [vmem:[#allocation5 + $0x10] ss:$8 sps:$4 sm:$0xff]   ;;  %v176_v6 = vpack.c.bf16 %v175_v5, %v175_v5 }
  0x57   : > { %206 = vmatpush1.bf16.msra.mxu0 %v426_v2  ;;  %vm201_vm0 = vcmask 261120   ;;  %s352_s15 = sshll.u32 %s717_s20, 4  ;;  %s363_s22 = sshll.u32 %s602_s13, 8 }
  0x58   : > { %207 = vmatprep.subr.bf16.mxu0 %v427_v3  ;;  %s173_s17 = scalar_lea.vmem [#allocation7], %s352_s15  ;;  %s736_s30 = scalar_lea.hbm %s780_s2, %s363_s22 }
  0x59   : > { %s263_s27 = sshll.u32 %s173_s17, 4  ;;  %s249_s3 = scalar_lea.sflag [#allocation4], %s717_s20  ;;  %s731_s27 = int_to_ptr.vmem [resolvable:$true] %s263_s27 }
  0x5a   : > { %s488_s4 = scalar_lea.vmem %s731_s27, 256  ;;  %s565_s13 = smov [#allocation7]  }
  0x5b   : > { %208 = vmatpush1.bf16.msra.mxu0 %v429_v4  ;;  %p489_p4 = scmp.ne.s32.totalorder %s731_s27, %s488_s4  ;;  %s492_s5 = sshll.u32 %s565_s13, 4  ;;  %s493_s5 = int_to_ptr.vmem [resolvable:$false] %s492_s5 }
  0x5c   : > { %s494_s6 = scalar_lea.vmem %s493_s5, 512  ;;  %p495_p10 = scmp.lt.s32.totalorder %s731_s27, %s493_s5 }
  0x5d   : > { %p490_p6 = pnand %p489_p4, %p672_p12  ;;  %p496_p13 = scmp.lt.s32.totalorder %s494_s6, %s488_s4 }
  0x5e   : > { %357 = vmatmul.mubr.msk.bf16.vlgmr.msra.gmra.mrb[0].mxu0 %vm201_vm0, %v176_v6 }
  0x5f   : > { %p491_p8 = pneg %p490_p6  ;;  %p497_p3 = por %p496_p13, %p495_p10 }
  0x61   : > { %p498_p7 = pnand %p497_p3, %p491_p8 }
 0x131   : > { %v239_v7 = vpop.f32.mrb[0].mxu0 }
 0x132   : > { %246 = vst [vmem:[%s173_s17] sm:$0xff] %v239_v7  ;;  %v241_v8 = vpop.f32.mrb[1].mxu0 }
 0x133   : > { %247 = vst [vmem:[%s173_s17 + $0x8] sm:$0xff] %v241_v8  ;;  %v243_v9 = vpop.f32.mrb[2].mxu0 }
 0x134   : > { %v244_v10 = vpop.f32.mrb[3].mxu0 }
 0x135   : > { %501 = shalt.err (!%p498_p7)
}
 0x136   : > { %s502_s7 = scalar_lea.hbm %s736_s30, 256  ;;  %s506_s25 = scalar_lea.hbm %s780_s2, 512 }
 0x137   : > { %p503_p9 = scmp.ne.s32.totalorder %s736_s30, %s502_s7  ;;  %p507_p0 = scmp.lt.u32.totalorder %s736_s30, %s780_s2 }
 0x138   : > { %p508_p1 = scmp.lt.u32.totalorder %s506_s25, %s502_s7  ;;  %p510_p4 = scmp.lt.u32.totalorder %s502_s7, %s736_s30 }
 0x139   : > { %p504_p2 = pnand %p503_p9, %p672_p12 }
 0x13a   : > { %p509_p11 = por %p508_p1, %p507_p0 }
 0x13b   : > { %p505_p5 = pneg %p504_p2 }
 0x13c   : > { %p511_p6 = por %p510_p4, %p509_p11 }
 0x13e   : > { %p512_p8 = pnand %p511_p6, %p505_p5 }
 0x140   : > { %515 = shalt.err (!%p512_p8)
}
 0x141   : > { %370 = dma.vmem_to_hbm [thread:$0]  (%p672_p12), %s731_s27, 256, %s736_s30, %s249_s3  }
 0x142 PF: > { %s275_s19 = sand.u32 1, %s546_s9   ;;  %p795_p10 = scmp.ne.s32.totalorder %s785_s16, 0 }
 0x143   : > { %p796_p13 = scmp.ge.s32.totalorder %s558_s12, 2  ;;  %s276_s29 = scalar_lea.sflag [#allocation4], %s275_s19 }
 0x145   : > { %p381_p3 = pnand %p796_p13, %p795_p10 }
 0x147   : > { %541 = dma.done.wait (!%p381_p3), %s276_s29, 256  }
 0x148   : > { %543 = vsyncadd (!%p381_p3), %s276_s29, 4294967040  ;;  %p16_p7 = scmp.ge.s32.totalorder %s637_s21, 4   ;;  %s797_s9 = smov %s550_s10 }
 0x149   : > { %s798_s10 = smov %s554_s11  ;;  %s799_s11 = smov %s668_s8 }
 0x14a   : > { %s800_s12 = smov %s637_s21  ;;  %18 = sbr.rel (!%p16_p7) target bundleno = 6 (0x6), region = 77 }
 0x151   :  { %281 = vsyncpa [#allocation3], 1 }
 0x152   :  { %283 = vsyncpa [#allocation3 + $0x1], 1 }
 0x153   :  { %284 = vsyncpa [#allocation6], 1 }
 0x154   :  { %285 = vsyncpa [#allocation4], 1 }
 0x155   :  { %287 = vsyncpa [#allocation4 + $0x1], 1 }

</bundles_post_ra>
